<compile_context>
chip_gen: v6e
topology: v6e:2x2x1
jax: 0.10.0
libtpu: 0.0.40
codegen_flags: <defaults>
</compile_context>

<pallas_src>
import functools

import numpy as np
import jax
import jax.numpy as jnp
from jax import lax
from jax.experimental import pallas as pl
from jax.experimental.pallas import tpu as pltpu


def _round_up(n, m):
    return (n + m - 1) // m * m


def _vmem_usage_bytes(chunk_steps, B_pad, I_pad, H_pad, in_bytes, out_bytes):
    """Approximate VMEM footprint of one kernel instance (double-buffered I/O)."""
    rows = chunk_steps * B_pad
    use = 2 * rows * I_pad * in_bytes        # x chunk (bf16, double-buffered)
    use += 2 * rows * H_pad * out_bytes      # out chunk (double-buffered)
    use += rows * H_pad * 4                  # p_scratch (f32, single)
    use += 2 * I_pad * H_pad * in_bytes      # W_in^T (constant index map, 2 bufs)
    use += 2 * H_pad * H_pad * in_bytes      # W_hh^T (constant index map, 2 bufs)
    use += 2 * H_pad * 4                     # folded bias
    use += 2 * B_pad * H_pad * 4             # h0
    use += B_pad * H_pad * 4                 # h_scratch
    return use


def _pick_time_chunk(T, B_pad, I_pad, H_pad, in_bytes, out_bytes,
                     budget_bytes):
    """Largest time chunk that fits the VMEM budget, targeting ~1024-row tiles."""
    fixed = (2 * I_pad * H_pad * in_bytes + 2 * H_pad * H_pad * in_bytes
             + 2 * H_pad * 4 + 3 * B_pad * H_pad * 4)
    per_step = B_pad * (2 * I_pad * in_bytes + 2 * H_pad * out_bytes
                        + H_pad * 4)
    max_steps = max(1, (budget_bytes - fixed) // per_step)
    target = max(1, 1024 // B_pad)   # ~1024 rows keeps matmul/output DMA dense
    return int(max(1, min(T, target, max_steps)))


def _ctrnn_kernel(x_ref, w_in_ref, bias_ref, w_hh_ref, h0_ref, out_ref,
                  h_scratch, p_scratch, *, alpha, chunk_steps, batch_pad,
                  unroll):
    # Initialize the persistent hidden state on the first chunk only.
    @pl.when(pl.program_id(0) == 0)
    def _():
        h_scratch[...] = h0_ref[...]

    # Hoisted input projection for this chunk: one MXU matmul + folded bias.
    p_scratch[...] = (
        jnp.dot(x_ref[...], w_in_ref[...], preferred_element_type=jnp.float32)
        + bias_ref[...])

    h0f = h_scratch[...]                                   # (B_pad, H_pad) f32
    carry0 = (h0f, h0f.astype(w_hh_ref.dtype))

    def step(t, carry):
        h, h_bf = carry
        base = pl.multiple_of(t * batch_pad, batch_pad)
        pre = p_scratch[pl.ds(base, batch_pad), :] + jnp.dot(
            h_bf, w_hh_ref[...], preferred_element_type=jnp.float32)
        h_new = jnp.tanh(pre)                              # EUP, f32
        h_next = h + alpha * (h_new - h)                   # leaky update, f32
        out_ref[pl.ds(base, batch_pad), :] = h_next.astype(out_ref.dtype)
        # Cast for the next step's matmul here (off the next step's chain).
        return (h_next, h_next.astype(w_hh_ref.dtype))

    h_final, _ = lax.fori_loop(0, chunk_steps, step, carry0, unroll=unroll)
    h_scratch[...] = h_final


def ctrnn_forward(x, w_in, b_in, w_hh, b_hh, h0=None, *, alpha,
                  compute_dtype=jnp.bfloat16, out_dtype=None,
                  time_chunk=None, vmem_budget_bytes=48 * 1024 * 1024):
    """CTRNN forward.

    x:    (T, B, I) input sequence.
    w_in: (H, I), b_in: (H,)  -- PyTorch nn.Linear(input_size, hidden_size).
    w_hh: (H, H), b_hh: (H,)  -- PyTorch nn.Linear(hidden_size, hidden_size).
    h0:   (B, H) or None (-> zeros, as in the module's init_hidden).
    out_dtype: output dtype (default x.dtype; pass bf16 to halve writeback).
    Returns (output (T, B, H), final hidden (B, H)).
    """
    T, B, I = x.shape
    H = w_hh.shape[0]
    out_dtype = x.dtype if out_dtype is None else out_dtype

    B_pad = _round_up(B, 8)       # sublane multiple
    H_pad = _round_up(H, 128)     # lane multiple (128 only; do not over-pad)
    I_pad = _round_up(I, 128)

    in_bytes = np.dtype(compute_dtype).itemsize
    out_bytes = np.dtype(out_dtype).itemsize

    if time_chunk is None:
        time_chunk = _pick_time_chunk(T, B_pad, I_pad, H_pad, in_bytes,
                                      out_bytes, vmem_budget_bytes)
    time_chunk = int(max(1, min(int(time_chunk), T)))
    T_pad = _round_up(T, time_chunk)
    num_chunks = T_pad // time_chunk
    rows = time_chunk * B_pad

    # Pre-transposed, zero-padded, bf16 weights (padded rows/cols contribute 0).
    w_in_t = jnp.zeros((I_pad, H_pad), compute_dtype).at[:I, :H].set(
        w_in.T.astype(compute_dtype))
    w_hh_t = jnp.zeros((H_pad, H_pad), compute_dtype).at[:H, :H].set(
        w_hh.T.astype(compute_dtype))
    # Folded bias (b_in + b_hh), kept in f32.
    bias = jnp.zeros((1, H_pad), jnp.float32).at[0, :H].set(
        (b_in + b_hh).astype(jnp.float32))

    if h0 is None:
        h0_p = jnp.zeros((B_pad, H_pad), jnp.float32)
    else:
        h0_p = jnp.zeros((B_pad, H_pad), jnp.float32).at[:B, :H].set(
            h0.astype(jnp.float32))

    # (T, B, I) -> padded, flattened (T_pad*B_pad, I_pad) lane-dense bf16 slab.
    x_p = jnp.pad(x.astype(compute_dtype),
                  ((0, T_pad - T), (0, B_pad - B), (0, I_pad - I)))
    x2d = x_p.reshape(T_pad * B_pad, I_pad)

    unroll = True if time_chunk <= 16 else 8

    kernel = functools.partial(_ctrnn_kernel, alpha=float(alpha),
                               chunk_steps=time_chunk, batch_pad=B_pad,
                               unroll=unroll)

    # Explicit VMEM budget with ~25% headroom, capped at v7x's 64 MiB/TC.
    vmem_needed = _vmem_usage_bytes(time_chunk, B_pad, I_pad, H_pad,
                                    in_bytes, out_bytes)
    vmem_limit = int(min(max(int(vmem_needed * 1.25) + (2 << 20), 8 << 20),
                         64 * 1024 * 1024))

    out2d = pl.pallas_call(
        kernel,
        out_shape=jax.ShapeDtypeStruct((T_pad * B_pad, H_pad), out_dtype),
        grid_spec=pltpu.PrefetchScalarGridSpec(
            num_scalar_prefetch=0,
            grid=(num_chunks,),   # time chunks stream through the pipeline
            in_specs=[
                pl.BlockSpec((rows, I_pad), lambda t: (t, 0)),    # x chunk
                pl.BlockSpec((I_pad, H_pad), lambda t: (0, 0)),   # W_in^T
                pl.BlockSpec((1, H_pad), lambda t: (0, 0)),       # folded bias
                pl.BlockSpec((H_pad, H_pad), lambda t: (0, 0)),   # W_hh^T
                pl.BlockSpec((B_pad, H_pad), lambda t: (0, 0)),   # h0
            ],
            out_specs=pl.BlockSpec((rows, H_pad), lambda t: (t, 0)),
            scratch_shapes=[
                pltpu.VMEM((B_pad, H_pad), jnp.float32),   # persistent hidden
                pltpu.VMEM((rows, H_pad), jnp.float32),    # per-chunk input proj
            ],
        ),
        compiler_params=pltpu.CompilerParams(
            dimension_semantics=("arbitrary",),   # sequential carried recurrence
            vmem_limit_bytes=vmem_limit,
        ),
    )(x2d, w_in_t, bias, w_hh_t, h0_p)

    out = out2d.reshape(T_pad, B_pad, H_pad)[:T, :B, :H]
    h_final = out[-1]          # final hidden == last output of the recurrence
    return out, h_final


def _reference(x, w_in, b_in, w_hh, b_hh, h0, alpha,
               compute_dtype=jnp.bfloat16):
    """Pure-JAX reference of the PyTorch forward (same bf16 matmul casting)."""
    w_in_t = w_in.T.astype(compute_dtype)
    w_hh_t = w_hh.T.astype(compute_dtype)
    bias = (b_in + b_hh).astype(jnp.float32)

    def step(h, x_t):
        pre = (jnp.dot(x_t.astype(compute_dtype), w_in_t,
                       preferred_element_type=jnp.float32)
               + bias
               + jnp.dot(h.astype(compute_dtype), w_hh_t,
                         preferred_element_type=jnp.float32))
        h_new = jnp.tanh(pre)
        h = h + alpha * (h_new - h)
        return h, h

    h_final, out = lax.scan(step, h0.astype(jnp.float32), x)
    return out, h_final


if __name__ == "__main__":
    # Small shapes consistent with the module: seq=8, batch=2, input=4, hidden=32.
    T, B, I, H = 8, 2, 4, 32
    dt, tau = 20.0, 100.0
    alpha = dt / tau

    key = jax.random.PRNGKey(0)
    k_x, k_wi, k_bi, k_wh, k_bh = jax.random.split(key, 5)

    x = jax.random.normal(k_x, (T, B, I), dtype=jnp.float32)

    # PyTorch Linear-style parameters: W_in (H, I), W_hh (H, H), biases (H,).
    bound_in = 1.0 / (I ** 0.5)
    bound_hh = 1.0 / (H ** 0.5)
    w_in = jax.random.uniform(k_wi, (H, I), jnp.float32, -bound_in, bound_in)
    b_in = jax.random.uniform(k_bi, (H,), jnp.float32, -bound_in, bound_in)
    w_hh = jax.random.uniform(k_wh, (H, H), jnp.float32, -bound_hh, bound_hh)
    b_hh = jax.random.uniform(k_bh, (H,), jnp.float32, -bound_hh, bound_hh)

    # hidden=None in the PyTorch module -> zeros initial hidden state.
    h0 = jnp.zeros((B, H), jnp.float32)
    out_ref, h_ref = _reference(x, w_in, b_in, w_hh, b_hh, h0, alpha)

    # Exercise: auto-chunked (single chunk here), multi-chunk streaming, and
    # multi-chunk with time padding (T_pad > T).
    for tc in (None, 2, 3):
        out, h_final = ctrnn_forward(x, w_in, b_in, w_hh, b_hh, None,
                                     alpha=alpha, time_chunk=tc)
        out = jax.block_until_ready(out)
        h_final = jax.block_until_ready(h_final)
        assert out.shape == (T, B, H) and h_final.shape == (B, H)
        assert jnp.allclose(out, out_ref, atol=2e-3, rtol=2e-3), (
            tc, float(jnp.max(jnp.abs(out - out_ref))))
        assert jnp.allclose(h_final, h_ref, atol=2e-3, rtol=2e-3), tc

    print("KERNEL_OK")
</pallas_src>

<mosaic_0001>
module attributes {stable_mosaic.version = 11 : i64} {
  func.func @_ctrnn_kernel(%arg0: i32, %arg1: memref<64x128xbf16, #tpu.memory_space<vmem>>, %arg2: memref<128x128xbf16, #tpu.memory_space<vmem>>, %arg3: memref<1x128xf32, #tpu.memory_space<vmem>>, %arg4: memref<128x128xbf16, #tpu.memory_space<vmem>>, %arg5: memref<8x128xf32, #tpu.memory_space<vmem>>, %arg6: memref<64x128xf32, #tpu.memory_space<vmem>>, %arg7: memref<8x128xf32, #tpu.memory_space<vmem>>, %arg8: memref<64x128xf32, #tpu.memory_space<vmem>>) attributes {dimension_semantics = [#tpu.dimension_semantics<arbitrary>], iteration_bounds = array<i64: 1>, scalar_prefetch = 0 : i64, scratch_operands = 2 : i64, tpu.core_type = #tpu.core_type<tc>, window_params = [{transform_indices = @transform_0, window_bounds = array<i64: 64, 128>}, {pipeline_mode = #tpu.pipeline_mode<synchronous>, transform_indices = @transform_1, window_bounds = array<i64: 128, 128>}, {pipeline_mode = #tpu.pipeline_mode<synchronous>, transform_indices = @transform_2, window_bounds = array<i64: 1, 128>}, {pipeline_mode = #tpu.pipeline_mode<synchronous>, transform_indices = @transform_3, window_bounds = array<i64: 128, 128>}, {pipeline_mode = #tpu.pipeline_mode<synchronous>, transform_indices = @transform_4, window_bounds = array<i64: 8, 128>}, {transform_indices = @transform_5, window_bounds = array<i64: 64, 128>}]} {
    %c0_i32 = arith.constant 0 : i32
    %0 = arith.cmpi eq, %arg0, %c0_i32 : i32
    %1 = arith.extui %0 : i1 to i32
    %c0_i32_0 = arith.constant 0 : i32
    %2 = arith.cmpi ne, %1, %c0_i32_0 : i32
    scf.if %2 {
      %c0_69 = arith.constant 0 : index
      %c0_70 = arith.constant 0 : index
      %133 = vector.load %arg5[%c0_69, %c0_70] : memref<8x128xf32, #tpu.memory_space<vmem>>, vector<8x128xf32>
      %c0_71 = arith.constant 0 : index
      %c0_72 = arith.constant 0 : index
      %134 = vector.load %arg7[%c0_71, %c0_72] : memref<8x128xf32, #tpu.memory_space<vmem>>, vector<8x128xf32>
      tpu.vector_store %arg7[%c0_71, %c0_72], %133 {strides = array<i32>} : memref<8x128xf32, #tpu.memory_space<vmem>>, vector<8x128xf32>,
    } else {
    }
    %c0 = arith.constant 0 : index
    %c0_1 = arith.constant 0 : index
    %3 = vector.load %arg1[%c0, %c0_1] : memref<64x128xbf16, #tpu.memory_space<vmem>>, vector<64x128xbf16>
    %c0_2 = arith.constant 0 : index
    %c0_3 = arith.constant 0 : index
    %4 = vector.load %arg2[%c0_2, %c0_3] : memref<128x128xbf16, #tpu.memory_space<vmem>>, vector<128x128xbf16>
    %cst = arith.constant dense<0.000000e+00> : vector<64x128xf32>
    %5 = tpu.matmul %3, %4, %cst {dimension_numbers = #tpu.dot_dimension_numbers<[1], [0], [0], [1], [0, 0, 1, 1], [], []>} : vector<64x128xbf16>, vector<128x128xbf16>, vector<64x128xf32> -> vector<64x128xf32>
    %c0_4 = arith.constant 0 : index
    %c0_5 = arith.constant 0 : index
    %6 = vector.load %arg3[%c0_4, %c0_5] : memref<1x128xf32, #tpu.memory_space<vmem>>, vector<1x128xf32>
    %7 = vector.broadcast %6 : vector<1x128xf32> to vector<64x128xf32>
    %8 = arith.addf %5, %7 : vector<64x128xf32>
    %c0_6 = arith.constant 0 : index
    %c0_7 = arith.constant 0 : index
    %9 = vector.load %arg8[%c0_6, %c0_7] : memref<64x128xf32, #tpu.memory_space<vmem>>, vector<64x128xf32>
    tpu.vector_store %arg8[%c0_6, %c0_7], %8 {strides = array<i32>} : memref<64x128xf32, #tpu.memory_space<vmem>>, vector<64x128xf32>,
    %c0_8 = arith.constant 0 : index
    %c0_9 = arith.constant 0 : index
    %10 = vector.load %arg7[%c0_8, %c0_9] : memref<8x128xf32, #tpu.memory_space<vmem>>, vector<8x128xf32>
    %11 = arith.truncf %10 : vector<8x128xf32> to vector<8x128xbf16>
    %c0_i32_10 = arith.constant 0 : i32
    %c8_i32 = arith.constant 8 : i32
    %12 = arith.muli %c0_i32_10, %c8_i32 : i32
    %13 = tpu.assume_multiple %12, 8 : i32
    %14 = arith.index_cast %13 : i32 to index
    %c0_11 = arith.constant 0 : index
    %15 = vector.load %arg8[%14, %c0_11] : memref<64x128xf32, #tpu.memory_space<vmem>>, vector<8x128xf32>
    %c0_12 = arith.constant 0 : index
    %c0_13 = arith.constant 0 : index
    %16 = vector.load %arg4[%c0_12, %c0_13] : memref<128x128xbf16, #tpu.memory_space<vmem>>, vector<128x128xbf16>
    %cst_14 = arith.constant dense<0.000000e+00> : vector<8x128xf32>
    %17 = tpu.matmul %11, %16, %cst_14 {dimension_numbers = #tpu.dot_dimension_numbers<[1], [0], [0], [1], [0, 0, 1, 1], [], []>} : vector<8x128xbf16>, vector<128x128xbf16>, vector<8x128xf32> -> vector<8x128xf32>
    %18 = arith.addf %15, %17 : vector<8x128xf32>
    %19 = math.tanh %18 : vector<8x128xf32>
    %20 = arith.subf %19, %10 : vector<8x128xf32>
    %cst_15 = arith.constant 2.000000e-01 : f32
    %21 = vector.broadcast %cst_15 : f32 to vector<8x128xf32>
    %22 = arith.mulf %21, %20 : vector<8x128xf32>
    %23 = arith.addf %10, %22 : vector<8x128xf32>
    %24 = arith.index_cast %13 : i32 to index
    %c0_16 = arith.constant 0 : index
    %25 = vector.load %arg6[%24, %c0_16] : memref<64x128xf32, #tpu.memory_space<vmem>>, vector<8x128xf32>
    tpu.vector_store %arg6[%24, %c0_16], %23 {strides = array<i32>} : memref<64x128xf32, #tpu.memory_space<vmem>>, vector<8x128xf32>,
    %26 = arith.truncf %23 : vector<8x128xf32> to vector<8x128xbf16>
    %c1_i32 = arith.constant 1 : i32
    %c8_i32_17 = arith.constant 8 : i32
    %27 = arith.muli %c1_i32, %c8_i32_17 : i32
    %28 = tpu.assume_multiple %27, 8 : i32
    %29 = arith.index_cast %28 : i32 to index
    %c0_18 = arith.constant 0 : index
    %30 = vector.load %arg8[%29, %c0_18] : memref<64x128xf32, #tpu.memory_space<vmem>>, vector<8x128xf32>
    %c0_19 = arith.constant 0 : index
    %c0_20 = arith.constant 0 : index
    %31 = vector.load %arg4[%c0_19, %c0_20] : memref<128x128xbf16, #tpu.memory_space<vmem>>, vector<128x128xbf16>
    %cst_21 = arith.constant dense<0.000000e+00> : vector<8x128xf32>
    %32 = tpu.matmul %26, %31, %cst_21 {dimension_numbers = #tpu.dot_dimension_numbers<[1], [0], [0], [1], [0, 0, 1, 1], [], []>} : vector<8x128xbf16>, vector<128x128xbf16>, vector<8x128xf32> -> vector<8x128xf32>
    %33 = arith.addf %30, %32 : vector<8x128xf32>
    %34 = math.tanh %33 : vector<8x128xf32>
    %35 = arith.subf %34, %23 : vector<8x128xf32>
    %cst_22 = arith.constant 2.000000e-01 : f32
    %36 = vector.broadcast %cst_22 : f32 to vector<8x128xf32>
    %37 = arith.mulf %36, %35 : vector<8x128xf32>
    %38 = arith.addf %23, %37 : vector<8x128xf32>
    %39 = arith.index_cast %28 : i32 to index
    %c0_23 = arith.constant 0 : index
    %40 = vector.load %arg6[%39, %c0_23] : memref<64x128xf32, #tpu.memory_space<vmem>>, vector<8x128xf32>
    tpu.vector_store %arg6[%39, %c0_23], %38 {strides = array<i32>} : memref<64x128xf32, #tpu.memory_space<vmem>>, vector<8x128xf32>,
    %41 = arith.truncf %38 : vector<8x128xf32> to vector<8x128xbf16>
    %c2_i32 = arith.constant 2 : i32
    %c8_i32_24 = arith.constant 8 : i32
    %42 = arith.muli %c2_i32, %c8_i32_24 : i32
    %43 = tpu.assume_multiple %42, 8 : i32
    %44 = arith.index_cast %43 : i32 to index
    %c0_25 = arith.constant 0 : index
    %45 = vector.load %arg8[%44, %c0_25] : memref<64x128xf32, #tpu.memory_space<vmem>>, vector<8x128xf32>
    %c0_26 = arith.constant 0 : index
    %c0_27 = arith.constant 0 : index
    %46 = vector.load %arg4[%c0_26, %c0_27] : memref<128x128xbf16, #tpu.memory_space<vmem>>, vector<128x128xbf16>
    %cst_28 = arith.constant dense<0.000000e+00> : vector<8x128xf32>
    %47 = tpu.matmul %41, %46, %cst_28 {dimension_numbers = #tpu.dot_dimension_numbers<[1], [0], [0], [1], [0, 0, 1, 1], [], []>} : vector<8x128xbf16>, vector<128x128xbf16>, vector<8x128xf32> -> vector<8x128xf32>
    %48 = arith.addf %45, %47 : vector<8x128xf32>
    %49 = math.tanh %48 : vector<8x128xf32>
    %50 = arith.subf %49, %38 : vector<8x128xf32>
    %cst_29 = arith.constant 2.000000e-01 : f32
    %51 = vector.broadcast %cst_29 : f32 to vector<8x128xf32>
    %52 = arith.mulf %51, %50 : vector<8x128xf32>
    %53 = arith.addf %38, %52 : vector<8x128xf32>
    %54 = arith.index_cast %43 : i32 to index
    %c0_30 = arith.constant 0 : index
    %55 = vector.load %arg6[%54, %c0_30] : memref<64x128xf32, #tpu.memory_space<vmem>>, vector<8x128xf32>
    tpu.vector_store %arg6[%54, %c0_30], %53 {strides = array<i32>} : memref<64x128xf32, #tpu.memory_space<vmem>>, vector<8x128xf32>,
    %56 = arith.truncf %53 : vector<8x128xf32> to vector<8x128xbf16>
    %c3_i32 = arith.constant 3 : i32
    %c8_i32_31 = arith.constant 8 : i32
    %57 = arith.muli %c3_i32, %c8_i32_31 : i32
    %58 = tpu.assume_multiple %57, 8 : i32
    %59 = arith.index_cast %58 : i32 to index
    %c0_32 = arith.constant 0 : index
    %60 = vector.load %arg8[%59, %c0_32] : memref<64x128xf32, #tpu.memory_space<vmem>>, vector<8x128xf32>
    %c0_33 = arith.constant 0 : index
    %c0_34 = arith.constant 0 : index
    %61 = vector.load %arg4[%c0_33, %c0_34] : memref<128x128xbf16, #tpu.memory_space<vmem>>, vector<128x128xbf16>
    %cst_35 = arith.constant dense<0.000000e+00> : vector<8x128xf32>
    %62 = tpu.matmul %56, %61, %cst_35 {dimension_numbers = #tpu.dot_dimension_numbers<[1], [0], [0], [1], [0, 0, 1, 1], [], []>} : vector<8x128xbf16>, vector<128x128xbf16>, vector<8x128xf32> -> vector<8x128xf32>
    %63 = arith.addf %60, %62 : vector<8x128xf32>
    %64 = math.tanh %63 : vector<8x128xf32>
    %65 = arith.subf %64, %53 : vector<8x128xf32>
    %cst_36 = arith.constant 2.000000e-01 : f32
    %66 = vector.broadcast %cst_36 : f32 to vector<8x128xf32>
    %67 = arith.mulf %66, %65 : vector<8x128xf32>
    %68 = arith.addf %53, %67 : vector<8x128xf32>
    %69 = arith.index_cast %58 : i32 to index
    %c0_37 = arith.constant 0 : index
    %70 = vector.load %arg6[%69, %c0_37] : memref<64x128xf32, #tpu.memory_space<vmem>>, vector<8x128xf32>
    tpu.vector_store %arg6[%69, %c0_37], %68 {strides = array<i32>} : memref<64x128xf32, #tpu.memory_space<vmem>>, vector<8x128xf32>,
    %71 = arith.truncf %68 : vector<8x128xf32> to vector<8x128xbf16>
    %c4_i32 = arith.constant 4 : i32
    %c8_i32_38 = arith.constant 8 : i32
    %72 = arith.muli %c4_i32, %c8_i32_38 : i32
    %73 = tpu.assume_multiple %72, 8 : i32
    %74 = arith.index_cast %73 : i32 to index
    %c0_39 = arith.constant 0 : index
    %75 = vector.load %arg8[%74, %c0_39] : memref<64x128xf32, #tpu.memory_space<vmem>>, vector<8x128xf32>
    %c0_40 = arith.constant 0 : index
    %c0_41 = arith.constant 0 : index
    %76 = vector.load %arg4[%c0_40, %c0_41] : memref<128x128xbf16, #tpu.memory_space<vmem>>, vector<128x128xbf16>
    %cst_42 = arith.constant dense<0.000000e+00> : vector<8x128xf32>
    %77 = tpu.matmul %71, %76, %cst_42 {dimension_numbers = #tpu.dot_dimension_numbers<[1], [0], [0], [1], [0, 0, 1, 1], [], []>} : vector<8x128xbf16>, vector<128x128xbf16>, vector<8x128xf32> -> vector<8x128xf32>
    %78 = arith.addf %75, %77 : vector<8x128xf32>
    %79 = math.tanh %78 : vector<8x128xf32>
    %80 = arith.subf %79, %68 : vector<8x128xf32>
    %cst_43 = arith.constant 2.000000e-01 : f32
    %81 = vector.broadcast %cst_43 : f32 to vector<8x128xf32>
    %82 = arith.mulf %81, %80 : vector<8x128xf32>
    %83 = arith.addf %68, %82 : vector<8x128xf32>
    %84 = arith.index_cast %73 : i32 to index
    %c0_44 = arith.constant 0 : index
    %85 = vector.load %arg6[%84, %c0_44] : memref<64x128xf32, #tpu.memory_space<vmem>>, vector<8x128xf32>
    tpu.vector_store %arg6[%84, %c0_44], %83 {strides = array<i32>} : memref<64x128xf32, #tpu.memory_space<vmem>>, vector<8x128xf32>,
    %86 = arith.truncf %83 : vector<8x128xf32> to vector<8x128xbf16>
    %c5_i32 = arith.constant 5 : i32
    %c8_i32_45 = arith.constant 8 : i32
    %87 = arith.muli %c5_i32, %c8_i32_45 : i32
    %88 = tpu.assume_multiple %87, 8 : i32
    %89 = arith.index_cast %88 : i32 to index
    %c0_46 = arith.constant 0 : index
    %90 = vector.load %arg8[%89, %c0_46] : memref<64x128xf32, #tpu.memory_space<vmem>>, vector<8x128xf32>
    %c0_47 = arith.constant 0 : index
    %c0_48 = arith.constant 0 : index
    %91 = vector.load %arg4[%c0_47, %c0_48] : memref<128x128xbf16, #tpu.memory_space<vmem>>, vector<128x128xbf16>
    %cst_49 = arith.constant dense<0.000000e+00> : vector<8x128xf32>
    %92 = tpu.matmul %86, %91, %cst_49 {dimension_numbers = #tpu.dot_dimension_numbers<[1], [0], [0], [1], [0, 0, 1, 1], [], []>} : vector<8x128xbf16>, vector<128x128xbf16>, vector<8x128xf32> -> vector<8x128xf32>
    %93 = arith.addf %90, %92 : vector<8x128xf32>
    %94 = math.tanh %93 : vector<8x128xf32>
    %95 = arith.subf %94, %83 : vector<8x128xf32>
    %cst_50 = arith.constant 2.000000e-01 : f32
    %96 = vector.broadcast %cst_50 : f32 to vector<8x128xf32>
    %97 = arith.mulf %96, %95 : vector<8x128xf32>
    %98 = arith.addf %83, %97 : vector<8x128xf32>
    %99 = arith.index_cast %88 : i32 to index
    %c0_51 = arith.constant 0 : index
    %100 = vector.load %arg6[%99, %c0_51] : memref<64x128xf32, #tpu.memory_space<vmem>>, vector<8x128xf32>
    tpu.vector_store %arg6[%99, %c0_51], %98 {strides = array<i32>} : memref<64x128xf32, #tpu.memory_space<vmem>>, vector<8x128xf32>,
    %101 = arith.truncf %98 : vector<8x128xf32> to vector<8x128xbf16>
    %c6_i32 = arith.constant 6 : i32
    %c8_i32_52 = arith.constant 8 : i32
    %102 = arith.muli %c6_i32, %c8_i32_52 : i32
    %103 = tpu.assume_multiple %102, 8 : i32
    %104 = arith.index_cast %103 : i32 to index
    %c0_53 = arith.constant 0 : index
    %105 = vector.load %arg8[%104, %c0_53] : memref<64x128xf32, #tpu.memory_space<vmem>>, vector<8x128xf32>
    %c0_54 = arith.constant 0 : index
    %c0_55 = arith.constant 0 : index
    %106 = vector.load %arg4[%c0_54, %c0_55] : memref<128x128xbf16, #tpu.memory_space<vmem>>, vector<128x128xbf16>
    %cst_56 = arith.constant dense<0.000000e+00> : vector<8x128xf32>
    %107 = tpu.matmul %101, %106, %cst_56 {dimension_numbers = #tpu.dot_dimension_numbers<[1], [0], [0], [1], [0, 0, 1, 1], [], []>} : vector<8x128xbf16>, vector<128x128xbf16>, vector<8x128xf32> -> vector<8x128xf32>
    %108 = arith.addf %105, %107 : vector<8x128xf32>
    %109 = math.tanh %108 : vector<8x128xf32>
    %110 = arith.subf %109, %98 : vector<8x128xf32>
    %cst_57 = arith.constant 2.000000e-01 : f32
    %111 = vector.broadcast %cst_57 : f32 to vector<8x128xf32>
    %112 = arith.mulf %111, %110 : vector<8x128xf32>
    %113 = arith.addf %98, %112 : vector<8x128xf32>
    %114 = arith.index_cast %103 : i32 to index
    %c0_58 = arith.constant 0 : index
    %115 = vector.load %arg6[%114, %c0_58] : memref<64x128xf32, #tpu.memory_space<vmem>>, vector<8x128xf32>
    tpu.vector_store %arg6[%114, %c0_58], %113 {strides = array<i32>} : memref<64x128xf32, #tpu.memory_space<vmem>>, vector<8x128xf32>,
    %116 = arith.truncf %113 : vector<8x128xf32> to vector<8x128xbf16>
    %c7_i32 = arith.constant 7 : i32
    %c8_i32_59 = arith.constant 8 : i32
    %117 = arith.muli %c7_i32, %c8_i32_59 : i32
    %118 = tpu.assume_multiple %117, 8 : i32
    %119 = arith.index_cast %118 : i32 to index
    %c0_60 = arith.constant 0 : index
    %120 = vector.load %arg8[%119, %c0_60] : memref<64x128xf32, #tpu.memory_space<vmem>>, vector<8x128xf32>
    %c0_61 = arith.constant 0 : index
    %c0_62 = arith.constant 0 : index
    %121 = vector.load %arg4[%c0_61, %c0_62] : memref<128x128xbf16, #tpu.memory_space<vmem>>, vector<128x128xbf16>
    %cst_63 = arith.constant dense<0.000000e+00> : vector<8x128xf32>
    %122 = tpu.matmul %116, %121, %cst_63 {dimension_numbers = #tpu.dot_dimension_numbers<[1], [0], [0], [1], [0, 0, 1, 1], [], []>} : vector<8x128xbf16>, vector<128x128xbf16>, vector<8x128xf32> -> vector<8x128xf32>
    %123 = arith.addf %120, %122 : vector<8x128xf32>
    %124 = math.tanh %123 : vector<8x128xf32>
    %125 = arith.subf %124, %113 : vector<8x128xf32>
    %cst_64 = arith.constant 2.000000e-01 : f32
    %126 = vector.broadcast %cst_64 : f32 to vector<8x128xf32>
    %127 = arith.mulf %126, %125 : vector<8x128xf32>
    %128 = arith.addf %113, %127 : vector<8x128xf32>
    %129 = arith.index_cast %118 : i32 to index
    %c0_65 = arith.constant 0 : index
    %130 = vector.load %arg6[%129, %c0_65] : memref<64x128xf32, #tpu.memory_space<vmem>>, vector<8x128xf32>
    tpu.vector_store %arg6[%129, %c0_65], %128 {strides = array<i32>} : memref<64x128xf32, #tpu.memory_space<vmem>>, vector<8x128xf32>,
    %131 = arith.truncf %128 : vector<8x128xf32> to vector<8x128xbf16>
    %c8_i32_66 = arith.constant 8 : i32
    %c0_67 = arith.constant 0 : index
    %c0_68 = arith.constant 0 : index
    %132 = vector.load %arg7[%c0_67, %c0_68] : memref<8x128xf32, #tpu.memory_space<vmem>>, vector<8x128xf32>
    tpu.vector_store %arg7[%c0_67, %c0_68], %128 {strides = array<i32>} : memref<8x128xf32, #tpu.memory_space<vmem>>, vector<8x128xf32>,
    return
  }
  func.func @transform_0(%arg0: i32) -> (i32, i32) {
    %c0_i32 = arith.constant 0 : i32
    %c0_i32_0 = arith.constant 0 : i32
    return %arg0, %c0_i32 : i32, i32
  }
  func.func @transform_1(%arg0: i32) -> (i32, i32) {
    %c0_i32 = arith.constant 0 : i32
    %c0_i32_0 = arith.constant 0 : i32
    %c0_i32_1 = arith.constant 0 : i32
    return %c0_i32, %c0_i32_0 : i32, i32
  }
  func.func @transform_2(%arg0: i32) -> (i32, i32) {
    %c0_i32 = arith.constant 0 : i32
    %c0_i32_0 = arith.constant 0 : i32
    %c0_i32_1 = arith.constant 0 : i32
    return %c0_i32, %c0_i32_0 : i32, i32
  }
  func.func @transform_3(%arg0: i32) -> (i32, i32) {
    %c0_i32 = arith.constant 0 : i32
    %c0_i32_0 = arith.constant 0 : i32
    %c0_i32_1 = arith.constant 0 : i32
    return %c0_i32, %c0_i32_0 : i32, i32
  }
  func.func @transform_4(%arg0: i32) -> (i32, i32) {
    %c0_i32 = arith.constant 0 : i32
    %c0_i32_0 = arith.constant 0 : i32
    %c0_i32_1 = arith.constant 0 : i32
    return %c0_i32, %c0_i32_0 : i32, i32
  }
  func.func @transform_5(%arg0: i32) -> (i32, i32) {
    %c0_i32 = arith.constant 0 : i32
    %c0_i32_0 = arith.constant 0 : i32
    return %arg0, %c0_i32 : i32, i32
  }
}

</mosaic_0001>

<bundles_post_ra>
// kernel: tpu_custom_call.1
= control target key start
LH: loop header
LB: loop body
LE: loop exit
PB: predicated region body
PF: predicated region fallthrough
CT: control target
= control target key end

     0   :  { %10 = vsyncpa [#allocation5], 0  ;;  %s1911_s0 = inlined_call_operand.hbm [shape: bf16[64,128], index: 0, kind: input, shape index: {}]   ;;  %s1912_s1 = inlined_call_operand.hbm [shape: bf16[128,128], index: 1, kind: input, shape index: {}]   ;;  %s1913_s2 = inlined_call_operand.vmem [shape: f32[1,128], index: 2, kind: input, shape index: {}]   ;;  %s1914_s3 = inlined_call_operand.hbm [shape: bf16[128,128], index: 3, kind: input, shape index: {}]   ;;  %s1915_s4 = inlined_call_operand.hbm [shape: f32[8,128], index: 4, kind: input, shape index: {}]   ;;  %s1916_s5 = inlined_call_operand.hbm [shape: f32[64,128], index: 5, kind: output, shape index: {}]  }
   0x1   :  { %11 = vsyncpa [#allocation8], 0 }
   0x2   :  { %12 = vsyncpa [#allocation11], 0 }
   0x3   :  { %13 = vsyncpa [#allocation6], 0  ;;  %s1744_s18 = smov [#allocation7]   ;;  %s1745_s20 = smov [#allocation4]  }
   0x4   :  { %s31_s19 = sshll.u32 %s1744_s18, 4  ;;  %s19_s21 = sshll.u32 %s1745_s20, 4  ;;  %s32_s19 = int_to_ptr.vmem [resolvable:$true] %s31_s19  ;;  %s20_s21 = int_to_ptr.vmem [resolvable:$true] %s19_s21 }
   0x5   :  { %s1644_s22 = scalar_lea.vmem %s32_s19, 1024  ;;  %p1649_p1 = scmp.lt.s32.totalorder %s32_s19, %s32_s19 }
   0x6   :  { %p1645_p0 = scmp.ne.s32.totalorder %s32_s19, %s1644_s22  ;;  %p1650_p2 = scmp.lt.s32.totalorder %s1644_s22, %s1644_s22 }
   0x8   :  { %p1651_p3 = por %p1650_p2, %p1649_p1 }
   0xa   :  { %p1652_p4 = pnand %p1651_p3, %p1645_p0 }
   0xc   :  { %1655 = shalt.err (!%p1652_p4)
}
   0xd   :  { %s1746_s23 = smov 64   ;;  %s1747_s24 = smov 4  }
   0xe   :  { %37 = dma.hbm_to_vmem [thread:$0]  %s1912_s1, 1024, %s32_s19, [#allocation8], %s1746_s23, %s1746_s23, %s1747_s24  }
   0xf   :  { %s1664_s27 = scalar_lea.vmem %s20_s21, 512  ;;  %p1669_p6 = scmp.lt.s32.totalorder %s20_s21, %s20_s21 }
  0x10   :  { %p1665_p5 = scmp.ne.s32.totalorder %s20_s21, %s1664_s27  ;;  %p1670_p7 = scmp.lt.s32.totalorder %s1664_s27, %s1664_s27 }
  0x12   :  { %p1671_p8 = por %p1670_p7, %p1669_p6 }
  0x14   :  { %p1672_p9 = pnand %p1671_p8, %p1665_p5 }
  0x16   :  { %1675 = shalt.err (!%p1672_p9)
}
  0x17   :  { %25 = dma.hbm_to_vmem [thread:$0]  %s1911_s0, 512, %s20_s21, [#allocation5], %s1746_s23, %s1746_s23, %s1747_s24  }
  0x18   :  { %s1748_s30 = smov [#allocation9]   ;;  %s1749_s7 = smov [#allocation10]  }
  0x19   :  { %s45_s6 = sshll.u32 %s1748_s30, 4  ;;  %s58_s8 = sshll.u32 %s1749_s7, 4  ;;  %s46_s6 = int_to_ptr.vmem [resolvable:$true] %s45_s6  ;;  %s59_s8 = int_to_ptr.vmem [resolvable:$true] %s58_s8 }
  0x1a   :  { %s1684_s9 = scalar_lea.vmem %s46_s6, 1024  ;;  %p1689_p11 = scmp.lt.s32.totalorder %s46_s6, %s46_s6 }
  0x1b   :  { %p1685_p10 = scmp.ne.s32.totalorder %s46_s6, %s1684_s9  ;;  %p1690_p12 = scmp.lt.s32.totalorder %s1684_s9, %s1684_s9 }
  0x1d   :  { %p1691_p13 = por %p1690_p12, %p1689_p11 }
  0x1f   :  { %p1692_p0 = pnand %p1691_p13, %p1685_p10 }
  0x21   :  { %1695 = shalt.err (!%p1692_p0)
}
  0x22   :  { %51 = dma.hbm_to_vmem [thread:$0]  %s1914_s3, 1024, %s46_s6, [#allocation8], %s1746_s23, %s1746_s23, %s1747_s24  }
  0x23   :  { %s1704_s11 = scalar_lea.vmem %s59_s8, 128  ;;  %p1709_p2 = scmp.lt.s32.totalorder %s59_s8, %s59_s8 }
  0x24   :  { %p1705_p1 = scmp.ne.s32.totalorder %s59_s8, %s1704_s11  ;;  %p1710_p3 = scmp.lt.s32.totalorder %s1704_s11, %s1704_s11 }
  0x26   :  { %p1711_p4 = por %p1710_p3, %p1709_p2 }
  0x28   :  { %p1712_p5 = pnand %p1711_p4, %p1705_p1 }
  0x2a   :  { %1715 = shalt.err (!%p1712_p5)
}
  0x2b   :  { %61 = dma.hbm_to_vmem [thread:$0]  %s1915_s4, 128, %s59_s8, [#allocation11]  }
  0x2c   :  { %1736 = dma.done.wait [#allocation5], 512  }
  0x2d   :  { %1737 = vsyncadd [#allocation5], 4294966784 }
  0x2e   :  { %1738 = dma.done.wait [#allocation8], 2048  }
  0x2f   :  { %1739 = vsyncadd [#allocation8], 4294965248 }
  0x30   :  { %1740 = dma.done.wait [#allocation11], 128  }
  0x31   :  { %1741 = vsyncadd [#allocation11], 4294967168  ;;  %v1750_v0 = vmov 0.0   ;;  %vm1751_vm0 = vmmov 0   ;;  %v1544_v1 = vld [vmem:[#allocation7 + $0x38] sm:$0xff]   ;;  %v1546_v3 = vld [vmem:[#allocation7 + $0x30] sm:$0xff]  }
  0x32   :  { %1373 = vmatprep.subr.bf16.mxu1 %v1750_v0  ;;  %1389 = vmatprep.mubr.msk.bf16.mxu1 %vm1751_vm0, %v1750_v0  ;;  %v1545_v2 = vld [vmem:[#allocation9 + $0x38] sm:$0xff]   ;;  %v1547_v4 = vld [vmem:[#allocation9 + $0x30] sm:$0xff]   ;;  %v1548_v5 = vld [vmem:[#allocation7 + $0x28] sm:$0xff]  }
  0x33   :  { %1349 = vmatprep.subr.bf16.mxu0 %v1544_v1  ;;  %1374 = vmatpush3.bf16.msra.mxu1 %v1545_v2  ;;  %v1549_v6 = vld [vmem:[#allocation9 + $0x28] sm:$0xff]   ;;  %v1550_v7 = vld [vmem:[#allocation7 + $0x20] sm:$0xff]   ;;  %v1552_v9 = vld [vmem:[#allocation7 + $0x18] sm:$0xff]  }
  0x34   :  { %1350 = vmatpush3.bf16.msra.mxu0 %v1544_v1  ;;  %1375 = vmatprep.subr.bf16.mxu1 %v1750_v0  ;;  %v1551_v8 = vld [vmem:[#allocation9 + $0x20] sm:$0xff]   ;;  %v1553_v10 = vld [vmem:[#allocation9 + $0x18] sm:$0xff]   ;;  %v1554_v11 = vld [vmem:[#allocation7 + $0x10] sm:$0xff]  }
  0x35   :  { %1351 = vmatprep.subr.bf16.mxu0 %v1546_v3  ;;  %v1560_v12 = vld [vmem:[#allocation4] sm:$0xff]   ;;  %v1555_v13 = vld [vmem:[#allocation9 + $0x10] sm:$0xff]   ;;  %v1556_v14 = vld [vmem:[#allocation7 + $0x8] sm:$0xff]  }
  0x36   :  { %1365 = vmatprep.mubr.bf16.mxu0 %v1560_v12  ;;  %v1557_v15 = vld [vmem:[#allocation9 + $0x8] sm:$0xff]   ;;  %v1558_v16 = vld [vmem:[#allocation7] sm:$0xff]   ;;  %v1562_v20 = vld [vmem:[#allocation9 + $0x38] sm:$0xff]  }
  0x37   :  { %1376 = vmatpush3.bf16.msra.mxu1 %v1547_v4  ;;  %v1559_v17 = vld [vmem:[#allocation9] sm:$0xff]   ;;  %v1561_v19 = vld [vmem:[#allocation4 + $0x8] sm:$0xff]   ;;  %v1563_v22 = vld [vmem:[#allocation9 + $0x30] sm:$0xff]  }
  0x38   :  { %1352 = vmatpush3.bf16.msra.mxu0 %v1546_v3  ;;  %1377 = vmatprep.subr.bf16.mxu1 %v1750_v0  ;;  %v79_v18 = vld [vmem:[#allocation10] sm:$0xff]  ;;  %v1564_v23 = vld [vmem:[#allocation9 + $0x28] sm:$0xff]   ;;  %v1566_v25 = vld [vmem:[#allocation4 + $0x10] sm:$0xff]  }
  0x39   :  { %1353 = vmatprep.subr.bf16.mxu0 %v1548_v5  ;;  %v258_v21 = vpack.c.bf16 %v79_v18, %v79_v18  ;;  %v1565_v24 = vld [vmem:[#allocation9 + $0x20] sm:$0xff]   ;;  %v1567_v26 = vld [vmem:[#allocation9 + $0x18] sm:$0xff]   ;;  %v1569_v28 = vld [vmem:[#allocation9 + $0x10] sm:$0xff]  }
  0x3a   :  { %v1568_v27 = vld [vmem:[#allocation4 + $0x18] sm:$0xff]   ;;  %v1570_v29 = vld [vmem:[#allocation9 + $0x8] sm:$0xff]   ;;  %v1571_v30 = vld [vmem:[#allocation9] sm:$0xff]  }
  0x3b   :  { %1378 = vmatpush3.bf16.msra.mxu1 %v1549_v6  ;;  %v1572_v31 = vld [vmem:[#allocation9 + $0x38] sm:$0xff]   ;;  %v1573_v32 = vld [vmem:[#allocation9 + $0x30] sm:$0xff]   ;;  %v1828_v35 = vld [vmem:[%s1913_s2] ss:$0 sm:$0xff]  ;;  %s1752_s2 = smov [#allocation12]  }
  0x3c   :  { %1354 = vmatpush3.bf16.msra.mxu0 %v1548_v5  ;;  %1379 = vmatprep.subr.bf16.mxu1 %v1750_v0  ;;  %v1574_v47 = vld [vmem:[#allocation9 + $0x28] sm:$0xff]   ;;  %v1575_v48 = vld [vmem:[#allocation9 + $0x20] sm:$0xff]   ;;  %v1576_v49 = vld [vmem:[#allocation9 + $0x18] sm:$0xff]   ;;  %s1174_s13 = sshll.u32 %s1752_s2, 4  ;;  %s1175_s13 = int_to_ptr.vmem [resolvable:$true] %s1174_s13 }
  0x3d   :  { %1355 = vmatprep.subr.bf16.mxu0 %v1550_v7  ;;  %v1577_v50 = vld [vmem:[#allocation9 + $0x10] sm:$0xff]   ;;  %v1578_v51 = vld [vmem:[#allocation9 + $0x8] sm:$0xff]   ;;  %v1579_v52 = vld [vmem:[#allocation9] sm:$0xff]   ;;  %s1716_s14 = scalar_lea.vmem %s1175_s13, 1024  ;;  %p1721_p7 = scmp.lt.s32.totalorder %s1175_s13, %s1175_s13 }
  0x3e   :  { %v1580_v53 = vld [vmem:[#allocation9 + $0x38] sm:$0xff]   ;;  %v1581_v54 = vld [vmem:[#allocation9 + $0x30] sm:$0xff]   ;;  %p1717_p6 = scmp.ne.s32.totalorder %s1175_s13, %s1716_s14  ;;  %p1722_p8 = scmp.lt.s32.totalorder %s1716_s14, %s1716_s14 }
  0x3f   :  { %1380 = vmatpush3.bf16.msra.mxu1 %v1551_v8  ;;  %v1585_v12 = vld [vmem:[#allocation9 + $0x10] sm:$0xff]  }
  0x40   :  { %1356 = vmatpush3.bf16.msra.mxu0 %v1550_v7  ;;  %1381 = vmatprep.subr.bf16.mxu1 %v1750_v0  ;;  %p1723_p9 = por %p1722_p8, %p1721_p7 }
  0x41   :  { %1357 = vmatprep.subr.bf16.mxu0 %v1552_v9 }
  0x42   :  { %p1724_p10 = pnand %p1723_p9, %p1717_p6 }
  0x43   :  { %1382 = vmatpush3.bf16.msra.mxu1 %v1553_v10  ;;  %v1583_v10 = vld [vmem:[#allocation9 + $0x20] sm:$0xff]  }
  0x44   :  { %1358 = vmatpush3.bf16.msra.mxu0 %v1552_v9  ;;  %1383 = vmatprep.subr.bf16.mxu1 %v1750_v0  ;;  %v1582_v9 = vld [vmem:[#allocation9 + $0x28] sm:$0xff]  }
  0x45   :  { %1359 = vmatprep.subr.bf16.mxu0 %v1554_v11 }
  0x47   :  { %1384 = vmatpush3.bf16.msra.mxu1 %v1555_v13  ;;  %v1586_v13 = vld [vmem:[#allocation9 + $0x8] sm:$0xff]  }
  0x48   :  { %1360 = vmatpush3.bf16.msra.mxu0 %v1554_v11  ;;  %1385 = vmatprep.subr.bf16.mxu1 %v1750_v0  ;;  %v1584_v11 = vld [vmem:[#allocation9 + $0x18] sm:$0xff]  }
  0x49   :  { %1361 = vmatprep.subr.bf16.mxu0 %v1556_v14 }
  0x4b   :  { %1386 = vmatpush3.bf16.msra.mxu1 %v1557_v15  ;;  %v1588_v15 = vld [vmem:[#allocation9 + $0x38] sm:$0xff]  }
  0x4c   :  { %1362 = vmatpush3.bf16.msra.mxu0 %v1556_v14  ;;  %1387 = vmatprep.subr.bf16.mxu1 %v1750_v0  ;;  %v1587_v14 = vld [vmem:[#allocation9] sm:$0xff]  }
  0x4d   :  { %1363 = vmatprep.subr.bf16.mxu0 %v1558_v16 }
  0x4f   :  { %1388 = vmatpush3.bf16.msra.mxu1 %v1559_v17 }
  0x50   :  { %1364 = vmatpush3.bf16.msra.mxu0 %v1558_v16  ;;  %1413 = vmatprep.subr.bf16.mxu1 %v1750_v0  ;;  %v1589_v16 = vld [vmem:[#allocation9 + $0x30] sm:$0xff]  }
  0x51   :  { %1393 = vmatprep.subr.bf16.mxu0 %v1750_v0 }
  0x52   :  { %1390 = vmatmul.mubr.bf16.vlgmr.msra.gmra.mxu1 %v258_v21 }
  0x53   :  { %1366 = vmatmul.mubr.bf16.vlgmr.msra.gmra.mxu0 %v1561_v19  ;;  %1429 = vmatprep.mubr.msk.bf16.mxu1 %vm1751_vm0, %v1750_v0 }
  0x54   :  { %1394 = vmatpush3.bf16.msra.mxu0 %v1562_v20  ;;  %1369 = vmatprep.mubr.bf16.mxu0 %v1566_v25 }
  0x55   :  { %1395 = vmatprep.subr.bf16.mxu0 %v1750_v0  ;;  %1414 = vmatpush3.bf16.msra.mxu1 %v1572_v31  ;;  %v1593_v31 = vld [vmem:[#allocation9 + $0x10] sm:$0xff]  }
  0x56   :  { %1415 = vmatprep.subr.bf16.mxu1 %v1750_v0 }
  0x58   :  { %1396 = vmatpush3.bf16.msra.mxu0 %v1563_v22 }
  0x59   :  { %1397 = vmatprep.subr.bf16.mxu0 %v1750_v0  ;;  %1416 = vmatpush3.bf16.msra.mxu1 %v1573_v32  ;;  %v1594_v32 = vld [vmem:[#allocation9 + $0x8] sm:$0xff]  }
  0x5a   :  { %1417 = vmatprep.subr.bf16.mxu1 %v1750_v0 }
  0x5b   :  { %1370 = vmatmul.mubr.bf16.gmra.mxu0 %v1568_v27 }
  0x5c   :  { %1398 = vmatpush3.bf16.msra.mxu0 %v1564_v23  ;;  %1409 = vmatprep.mubr.msk.bf16.mxu0 %vm1751_vm0, %v1750_v0 }
  0x5d   :  { %1399 = vmatprep.subr.bf16.mxu0 %v1750_v0  ;;  %1418 = vmatpush3.bf16.msra.mxu1 %v1574_v47 }
  0x5e   :  { %1419 = vmatprep.subr.bf16.mxu1 %v1750_v0 }
  0x60   :  { %1400 = vmatpush3.bf16.msra.mxu0 %v1565_v24 }
  0x61   :  { %1401 = vmatprep.subr.bf16.mxu0 %v1750_v0  ;;  %1420 = vmatpush3.bf16.msra.mxu1 %v1575_v48  ;;  %v1598_v48 = vld [vmem:[#allocation9 + $0x28] sm:$0xff]  }
  0x62   :  { %1421 = vmatprep.subr.bf16.mxu1 %v1750_v0 }
  0x64   :  { %1402 = vmatpush3.bf16.msra.mxu0 %v1567_v26 }
  0x65   :  { %1403 = vmatprep.subr.bf16.mxu0 %v1750_v0  ;;  %1422 = vmatpush3.bf16.msra.mxu1 %v1576_v49  ;;  %v1599_v49 = vld [vmem:[#allocation9 + $0x20] sm:$0xff]  }
  0x66   :  { %1423 = vmatprep.subr.bf16.mxu1 %v1750_v0 }
  0x68   :  { %1404 = vmatpush3.bf16.msra.mxu0 %v1569_v28  ;;  %v1590_v28 = vld [vmem:[#allocation9 + $0x28] sm:$0xff]  }
  0x69   :  { %1405 = vmatprep.subr.bf16.mxu0 %v1750_v0  ;;  %1424 = vmatpush3.bf16.msra.mxu1 %v1577_v50  ;;  %v1600_v50 = vld [vmem:[#allocation9 + $0x18] sm:$0xff]  }
  0x6a   :  { %1425 = vmatprep.subr.bf16.mxu1 %v1750_v0 }
  0x6c   :  { %1406 = vmatpush3.bf16.msra.mxu0 %v1570_v29  ;;  %v1591_v29 = vld [vmem:[#allocation9 + $0x20] sm:$0xff]  }
  0x6d   :  { %1407 = vmatprep.subr.bf16.mxu0 %v1750_v0  ;;  %1426 = vmatpush3.bf16.msra.mxu1 %v1578_v51  ;;  %v1601_v51 = vld [vmem:[#allocation9 + $0x10] sm:$0xff]  }
  0x6e   :  { %1427 = vmatprep.subr.bf16.mxu1 %v1750_v0 }
  0x70   :  { %1408 = vmatpush3.bf16.msra.mxu0 %v1571_v30  ;;  %v1592_v30 = vld [vmem:[#allocation9 + $0x18] sm:$0xff]  }
  0x71   :  { %1433 = vmatprep.subr.bf16.mxu0 %v1750_v0  ;;  %1428 = vmatpush3.bf16.msra.mxu1 %v1579_v52  ;;  %v1602_v52 = vld [vmem:[#allocation9 + $0x8] sm:$0xff]  }
  0x72   :  { %1453 = vmatprep.subr.bf16.mxu1 %v1750_v0 }
 0x112   :  { %v358_v33 = vpop.f32.mrf.mxu1 }
 0x113   :  { %v1823_v34 = vpop.f32.mrf.mxu0 }
 0x114   :  { %v1391_v36 = vpop.f32.mrf.mxu1  ;;  %v227_v17 = vadd.f32 %v1823_v34, %v1828_v35  ;;  %v1596_v34 = vld [vmem:[#allocation9 + $0x38] sm:$0xff]  }
 0x115   :  { %v218_v37 = vpop.f32.mrf.mxu0  ;;  %v1597_v36 = vld [vmem:[#allocation9 + $0x30] sm:$0xff]  }
 0x116   :  { %v219_v38 = vadd.f32 %v1828_v35, %v218_v37  ;;  %v361_v39 = vpop.f32.mrf.mxu1 }
 0x117   :  { %v1841_v55 = vpop.f32.mrf.mxu0 }
 0x118   :  { %v364_v40 = vadd.f32 %v358_v33, %v219_v38  ;;  %v1392_v41 = vpop.f32.mrf.mxu1  ;;  %v1595_v33 = vld [vmem:[#allocation9] sm:$0xff]   ;;  %v230_v37 = vadd.f32 %v1841_v55, %v1828_v35  ;;  %v1605_v55 = vld [vmem:[#allocation9 + $0x30] sm:$0xff]  }
 0x119   :  { %v221_v56 = vpop.f32.mrf.mxu0 }
 0x11a   :  { %1620 = vtanh.f32 %v364_v40  ;;  %v222_v61 = vadd.f32 %v1828_v35, %v221_v56 }
 0x11b   :  { %v1843_v57 = vpop.f32.mrf.mxu0 }
 0x11d   :  { %v1845_v58 = vpop.f32.mrf.mxu0 }
 0x11e   :  { %v235_v56 = vadd.f32 %v1828_v35, %v1845_v58  ;;  %v1607_v58 = vld [vmem:[#allocation9 + $0x20] sm:$0xff]  }
 0x11f   :  { %v1847_v59 = vpop.f32.mrf.mxu0 }
 0x121   :  { %v1849_v60 = vpop.f32.mrf.mxu0 }
 0x127   :  { %v1621_v42 = vpop.eup %1620 }
 0x128   :  { %v366_v43 = vsub.f32 %v1621_v42, %v79_v18 }
 0x12a   :  { %v367_v44 = vmul.f32 0.2, %v366_v43 }
 0x12c   :  { %v368_v45 = vadd.f32 %v367_v44, %v79_v18 }
 0x12e   :  { %369 = vst [vmem:[#allocation12] sm:$0xff] %v368_v45  ;;  %v370_v46 = vpack.c.bf16 %v368_v45, %v368_v45 }
 0x130   :  { %1410 = vmatmul.mubr.bf16.vlgmr.msra.gmra.mxu0 %v370_v46 }
 0x131   :  { %1449 = vmatprep.mubr.msk.bf16.mxu0 %vm1751_vm0, %v1750_v0  ;;  %1434 = vmatpush3.bf16.msra.mxu0 %v1580_v53  ;;  %v1603_v53 = vld [vmem:[#allocation9] sm:$0xff]  }
 0x132   :  { %1435 = vmatprep.subr.bf16.mxu0 %v1750_v0 }
 0x135   :  { %1436 = vmatpush3.bf16.msra.mxu0 %v1581_v54  ;;  %v1604_v54 = vld [vmem:[#allocation9 + $0x38] sm:$0xff]  }
 0x136   :  { %1437 = vmatprep.subr.bf16.mxu0 %v1750_v0 }
 0x139   :  { %1438 = vmatpush3.bf16.msra.mxu0 %v1582_v9  ;;  %v1608_v9 = vld [vmem:[#allocation9 + $0x18] sm:$0xff]  }
 0x13a   :  { %1439 = vmatprep.subr.bf16.mxu0 %v1750_v0 }
 0x13d   :  { %1440 = vmatpush3.bf16.msra.mxu0 %v1583_v10  ;;  %v1609_v10 = vld [vmem:[#allocation9 + $0x10] sm:$0xff]  }
 0x13e   :  { %1441 = vmatprep.subr.bf16.mxu0 %v1750_v0 }
 0x141   :  { %1442 = vmatpush3.bf16.msra.mxu0 %v1584_v11  ;;  %v1610_v11 = vld [vmem:[#allocation9 + $0x8] sm:$0xff]  }
 0x142   :  { %1443 = vmatprep.subr.bf16.mxu0 %v1750_v0 }
 0x145   :  { %1444 = vmatpush3.bf16.msra.mxu0 %v1585_v12  ;;  %v1611_v12 = vld [vmem:[#allocation9] sm:$0xff]  }
 0x146   :  { %1445 = vmatprep.subr.bf16.mxu0 %v1750_v0 }
 0x149   :  { %1446 = vmatpush3.bf16.msra.mxu0 %v1586_v13  ;;  %v1612_v13 = vld [vmem:[#allocation9 + $0x38] sm:$0xff]  }
 0x14a   :  { %1447 = vmatprep.subr.bf16.mxu0 %v1750_v0 }
 0x14d   :  { %1448 = vmatpush3.bf16.msra.mxu0 %v1587_v14  ;;  %v1613_v14 = vld [vmem:[#allocation9 + $0x30] sm:$0xff]  }
 0x14e   :  { %1473 = vmatprep.subr.bf16.mxu0 %v1750_v0 }
 0x1f0   :  { %v471_v62 = vpop.f32.mrf.mxu0 }
 0x1f1   :  { %v477_v63 = vadd.f32 %v471_v62, %v222_v61 }
 0x1f2   :  { %v1411_v1 = vpop.f32.mrf.mxu0 }
 0x1f3   :  { %1622 = vtanh.f32 %v477_v63 }
 0x1f4   :  { %v474_v2 = vpop.f32.mrf.mxu0 }
 0x1f6   :  { %v1412_v3 = vpop.f32.mrf.mxu0 }
 0x200   :  { %v1623_v4 = vpop.eup %1622 }
 0x201   :  { %v479_v5 = vsub.f32 %v1623_v4, %v368_v45 }
 0x203   :  { %v480_v6 = vmul.f32 0.2, %v479_v5 }
 0x205   :  { %v481_v7 = vadd.f32 %v480_v6, %v368_v45 }
 0x207   :  { %483 = vst [vmem:[#allocation12 + $0x8] sm:$0xff] %v481_v7  ;;  %v484_v8 = vpack.c.bf16 %v481_v7, %v481_v7 }
 0x209   :  { %1430 = vmatmul.mubr.bf16.vlgmr.msra.gmra.mxu1 %v484_v8  ;;  %v1606_v8 = vld [vmem:[#allocation9 + $0x28] sm:$0xff]  }
 0x20a   :  { %1469 = vmatprep.mubr.msk.bf16.mxu1 %vm1751_vm0, %v1750_v0  ;;  %1454 = vmatpush3.bf16.msra.mxu1 %v1588_v15  ;;  %v238_v15 = vadd.f32 %v1828_v35, %v1849_v60  ;;  %v1616_v60 = vld [vmem:[#allocation9 + $0x18] sm:$0xff]  }
 0x20b   :  { %1455 = vmatprep.subr.bf16.mxu1 %v1750_v0 }
 0x20e   :  { %1456 = vmatpush3.bf16.msra.mxu1 %v1589_v16 }
 0x20f   :  { %1457 = vmatprep.subr.bf16.mxu1 %v1750_v0 }
 0x212   :  { %1458 = vmatpush3.bf16.msra.mxu1 %v1590_v28  ;;  %v1617_v28 = vld [vmem:[#allocation9 + $0x10] sm:$0xff]  }
 0x213   :  { %1459 = vmatprep.subr.bf16.mxu1 %v1750_v0 }
 0x216   :  { %1460 = vmatpush3.bf16.msra.mxu1 %v1591_v29  ;;  %v1618_v29 = vld [vmem:[#allocation9 + $0x8] sm:$0xff]  }
 0x217   :  { %1461 = vmatprep.subr.bf16.mxu1 %v1750_v0 }
 0x21a   :  { %1462 = vmatpush3.bf16.msra.mxu1 %v1592_v30  ;;  %v1619_v30 = vld [vmem:[#allocation9] sm:$0xff]  }
 0x21b   :  { %1463 = vmatprep.subr.bf16.mxu1 %v1750_v0 }
 0x21e   :  { %1464 = vmatpush3.bf16.msra.mxu1 %v1593_v31  ;;  %v243_v31 = vadd.f32 %v1843_v57, %v1828_v35 }
 0x21f   :  { %1465 = vmatprep.subr.bf16.mxu1 %v1750_v0 }
 0x222   :  { %1466 = vmatpush3.bf16.msra.mxu1 %v1594_v32 }
 0x223   :  { %1467 = vmatprep.subr.bf16.mxu1 %v1750_v0 }
 0x226   :  { %1468 = vmatpush3.bf16.msra.mxu1 %v1595_v33 }
 0x227   :  { %1493 = vmatprep.subr.bf16.mxu1 %v1750_v0 }
 0x2c9   :  { %v585_v18 = vpop.f32.mrf.mxu1 }
 0x2ca   :  { %v591_v19 = vadd.f32 %v585_v18, %v227_v17 }
 0x2cb   :  { %v1431_v20 = vpop.f32.mrf.mxu1 }
 0x2cc   :  { %1624 = vtanh.f32 %v591_v19 }
 0x2cd   :  { %v588_v21 = vpop.f32.mrf.mxu1 }
 0x2cf   :  { %v1432_v22 = vpop.f32.mrf.mxu1 }
 0x2d9   :  { %v1625_v23 = vpop.eup %1624 }
 0x2da   :  { %v593_v24 = vsub.f32 %v1625_v23, %v481_v7 }
 0x2dc   :  { %v594_v25 = vmul.f32 0.2, %v593_v24 }
 0x2de   :  { %v595_v26 = vadd.f32 %v594_v25, %v481_v7 }
 0x2e0   :  { %597 = vst [vmem:[#allocation12 + $0x10] sm:$0xff] %v595_v26  ;;  %v598_v27 = vpack.c.bf16 %v595_v26, %v595_v26 }
 0x2e2   :  { %1450 = vmatmul.mubr.bf16.vlgmr.msra.gmra.mxu0 %v598_v27  ;;  %v1615_v27 = vld [vmem:[#allocation9 + $0x20] sm:$0xff]  }
 0x2e3   :  { %1489 = vmatprep.mubr.msk.bf16.mxu0 %vm1751_vm0, %v1750_v0  ;;  %1474 = vmatpush3.bf16.msra.mxu0 %v1596_v34 }
 0x2e4   :  { %1475 = vmatprep.subr.bf16.mxu0 %v1750_v0 }
 0x2e7   :  { %1476 = vmatpush3.bf16.msra.mxu0 %v1597_v36 }
 0x2e8   :  { %1477 = vmatprep.subr.bf16.mxu0 %v1750_v0 }
 0x2eb   :  { %1478 = vmatpush3.bf16.msra.mxu0 %v1598_v48 }
 0x2ec   :  { %1479 = vmatprep.subr.bf16.mxu0 %v1750_v0 }
 0x2ef   :  { %1480 = vmatpush3.bf16.msra.mxu0 %v1599_v49 }
 0x2f0   :  { %1481 = vmatprep.subr.bf16.mxu0 %v1750_v0 }
 0x2f3   :  { %1482 = vmatpush3.bf16.msra.mxu0 %v1600_v50 }
 0x2f4   :  { %1483 = vmatprep.subr.bf16.mxu0 %v1750_v0 }
 0x2f7   :  { %1484 = vmatpush3.bf16.msra.mxu0 %v1601_v51 }
 0x2f8   :  { %1485 = vmatprep.subr.bf16.mxu0 %v1750_v0 }
 0x2fb   :  { %1486 = vmatpush3.bf16.msra.mxu0 %v1602_v52 }
 0x2fc   :  { %1487 = vmatprep.subr.bf16.mxu0 %v1750_v0 }
 0x2ff   :  { %1488 = vmatpush3.bf16.msra.mxu0 %v1603_v53 }
 0x300   :  { %1513 = vmatprep.subr.bf16.mxu0 %v1750_v0 }
 0x3a2   :  { %v699_v38 = vpop.f32.mrf.mxu0 }
 0x3a3   :  { %v705_v39 = vadd.f32 %v699_v38, %v230_v37 }
 0x3a4   :  { %v1451_v40 = vpop.f32.mrf.mxu0 }
 0x3a5   :  { %1626 = vtanh.f32 %v705_v39 }
 0x3a6   :  { %v702_v41 = vpop.f32.mrf.mxu0 }
 0x3a8   :  { %v1452_v42 = vpop.f32.mrf.mxu0 }
 0x3b2   :  { %v1627_v43 = vpop.eup %1626 }
 0x3b3   :  { %v707_v44 = vsub.f32 %v1627_v43, %v595_v26 }
 0x3b5   :  { %v708_v45 = vmul.f32 0.2, %v707_v44 }
 0x3b7   :  { %v709_v46 = vadd.f32 %v708_v45, %v595_v26  ;;  %v1614_v26 = vld [vmem:[#allocation9 + $0x28] sm:$0xff]  }
 0x3b9   :  { %711 = vst [vmem:[#allocation12 + $0x18] sm:$0xff] %v709_v46  ;;  %v712_v47 = vpack.c.bf16 %v709_v46, %v709_v46 }
 0x3bb   :  { %1470 = vmatmul.mubr.bf16.vlgmr.msra.gmra.mxu1 %v712_v47 }
 0x3bc   :  { %1509 = vmatprep.mubr.msk.bf16.mxu1 %vm1751_vm0, %v1750_v0  ;;  %1494 = vmatpush3.bf16.msra.mxu1 %v1604_v54 }
 0x3bd   :  { %1495 = vmatprep.subr.bf16.mxu1 %v1750_v0 }
 0x3c0   :  { %1496 = vmatpush3.bf16.msra.mxu1 %v1605_v55 }
 0x3c1   :  { %1497 = vmatprep.subr.bf16.mxu1 %v1750_v0 }
 0x3c4   :  { %1498 = vmatpush3.bf16.msra.mxu1 %v1606_v8 }
 0x3c5   :  { %1499 = vmatprep.subr.bf16.mxu1 %v1750_v0 }
 0x3c8   :  { %1500 = vmatpush3.bf16.msra.mxu1 %v1607_v58 }
 0x3c9   :  { %1501 = vmatprep.subr.bf16.mxu1 %v1750_v0 }
 0x3cc   :  { %1502 = vmatpush3.bf16.msra.mxu1 %v1608_v9 }
 0x3cd   :  { %1503 = vmatprep.subr.bf16.mxu1 %v1750_v0 }
 0x3d0   :  { %1504 = vmatpush3.bf16.msra.mxu1 %v1609_v10 }
 0x3d1   :  { %1505 = vmatprep.subr.bf16.mxu1 %v1750_v0 }
 0x3d4   :  { %1506 = vmatpush3.bf16.msra.mxu1 %v1610_v11 }
 0x3d5   :  { %1507 = vmatprep.subr.bf16.mxu1 %v1750_v0 }
 0x3d8   :  { %1508 = vmatpush3.bf16.msra.mxu1 %v1611_v12 }
 0x47b   :  { %v813_v61 = vpop.f32.mrf.mxu1 }
 0x47c   :  { %v819_v62 = vadd.f32 %v813_v61, %v235_v56 }
 0x47d   :  { %v1471_v63 = vpop.f32.mrf.mxu1 }
 0x47e   :  { %1628 = vtanh.f32 %v819_v62 }
 0x47f   :  { %v816_v1 = vpop.f32.mrf.mxu1 }
 0x481   :  { %v1472_v2 = vpop.f32.mrf.mxu1 }
 0x48b   :  { %v1629_v3 = vpop.eup %1628 }
 0x48c   :  { %v821_v4 = vsub.f32 %v1629_v3, %v709_v46 }
 0x48e   :  { %v822_v5 = vmul.f32 0.2, %v821_v4 }
 0x490   :  { %v823_v6 = vadd.f32 %v822_v5, %v709_v46 }
 0x492   :  { %825 = vst [vmem:[#allocation12 + $0x20] sm:$0xff] %v823_v6  ;;  %v826_v7 = vpack.c.bf16 %v823_v6, %v823_v6 }
 0x494   :  { %1490 = vmatmul.mubr.bf16.vlgmr.msra.gmra.mxu0 %v826_v7 }
 0x495   :  { %1529 = vmatprep.mubr.msk.bf16.mxu0 %vm1751_vm0, %v1750_v0  ;;  %1514 = vmatpush3.bf16.msra.mxu0 %v1612_v13 }
 0x496   :  { %1515 = vmatprep.subr.bf16.mxu0 %v1750_v0 }
 0x499   :  { %1516 = vmatpush3.bf16.msra.mxu0 %v1613_v14 }
 0x49a   :  { %1517 = vmatprep.subr.bf16.mxu0 %v1750_v0 }
 0x49d   :  { %1518 = vmatpush3.bf16.msra.mxu0 %v1614_v26 }
 0x49e   :  { %1519 = vmatprep.subr.bf16.mxu0 %v1750_v0 }
 0x4a1   :  { %1520 = vmatpush3.bf16.msra.mxu0 %v1615_v27 }
 0x4a2   :  { %1521 = vmatprep.subr.bf16.mxu0 %v1750_v0 }
 0x4a5   :  { %1522 = vmatpush3.bf16.msra.mxu0 %v1616_v60 }
 0x4a6   :  { %1523 = vmatprep.subr.bf16.mxu0 %v1750_v0 }
 0x4a9   :  { %1524 = vmatpush3.bf16.msra.mxu0 %v1617_v28 }
 0x4aa   :  { %1525 = vmatprep.subr.bf16.mxu0 %v1750_v0 }
 0x4ad   :  { %1526 = vmatpush3.bf16.msra.mxu0 %v1618_v29 }
 0x4ae   :  { %1527 = vmatprep.subr.bf16.mxu0 %v1750_v0  ;;  %v246_v0 = vadd.f32 %v1847_v59, %v1828_v35 }
 0x4b1   :  { %1528 = vmatpush3.bf16.msra.mxu0 %v1619_v30 }
 0x554   :  { %v927_v16 = vpop.f32.mrf.mxu0 }
 0x555   :  { %v933_v17 = vadd.f32 %v927_v16, %v238_v15 }
 0x556   :  { %v1491_v18 = vpop.f32.mrf.mxu0 }
 0x557   :  { %1630 = vtanh.f32 %v933_v17 }
 0x558   :  { %v930_v19 = vpop.f32.mrf.mxu0 }
 0x55a   :  { %v1492_v20 = vpop.f32.mrf.mxu0 }
 0x564   :  { %v1631_v21 = vpop.eup %1630 }
 0x565   :  { %v935_v22 = vsub.f32 %v1631_v21, %v823_v6 }
 0x567   :  { %v936_v23 = vmul.f32 0.2, %v935_v22 }
 0x569   :  { %v937_v24 = vadd.f32 %v936_v23, %v823_v6 }
 0x56b   :  { %939 = vst [vmem:[#allocation12 + $0x28] sm:$0xff] %v937_v24  ;;  %v940_v25 = vpack.c.bf16 %v937_v24, %v937_v24 }
 0x56d   :  { %1510 = vmatmul.mubr.bf16.vlgmr.msra.gmra.mxu1 %v940_v25 }
 0x62d   :  { %v1041_v32 = vpop.f32.mrf.mxu1 }
 0x62e   :  { %v1047_v33 = vadd.f32 %v1041_v32, %v243_v31 }
 0x62f   :  { %v1511_v34 = vpop.f32.mrf.mxu1 }
 0x630   :  { %1632 = vtanh.f32 %v1047_v33 }
 0x631   :  { %v1044_v36 = vpop.f32.mrf.mxu1 }
 0x633   :  { %v1512_v37 = vpop.f32.mrf.mxu1 }
 0x63d   :  { %v1633_v38 = vpop.eup %1632 }
 0x63e   :  { %v1049_v39 = vsub.f32 %v1633_v38, %v937_v24 }
 0x640   :  { %v1050_v40 = vmul.f32 0.2, %v1049_v39 }
 0x642   :  { %v1051_v41 = vadd.f32 %v1050_v40, %v937_v24 }
 0x644   :  { %1053 = vst [vmem:[#allocation12 + $0x30] sm:$0xff] %v1051_v41  ;;  %v1054_v42 = vpack.c.bf16 %v1051_v41, %v1051_v41 }
 0x646   :  { %1530 = vmatmul.mubr.bf16.vlgmr.msra.gmra.mxu0 %v1054_v42 }
 0x706   :  { %v1155_v43 = vpop.f32.mrf.mxu0 }
 0x707   :  { %v1161_v44 = vadd.f32 %v1155_v43, %v246_v0 }
 0x708   :  { %v1531_v45 = vpop.f32.mrf.mxu0 }
 0x709   :  { %1634 = vtanh.f32 %v1161_v44 }
 0x70a   :  { %v1158_v57 = vpop.f32.mrf.mxu0 }
 0x70c   :  { %v1532_v46 = vpop.f32.mrf.mxu0 }
 0x716   :  { %v1635_v47 = vpop.eup %1634 }
 0x717   :  { %v1163_v48 = vsub.f32 %v1635_v47, %v1051_v41 }
 0x719   :  { %v1164_v49 = vmul.f32 0.2, %v1163_v48 }
 0x71b   :  { %v1165_v50 = vadd.f32 %v1164_v49, %v1051_v41 }
 0x71d   :  { %1167 = vst [vmem:[#allocation12 + $0x38] sm:$0xff] %v1165_v50 }
 0x71e   :  { %1727 = shalt.err (!%p1724_p10)
}
 0x71f   :  { %s1753_s15 = smov 128   ;;  %s1754_s16 = smov 8  }
 0x720   :  { %1180 = dma.vmem_to_hbm [thread:$0]  %s1175_s13, 1024, %s1916_s5, [#allocation6], %s1753_s15, %s1753_s15, %s1754_s16  }
 0x721   :  { %1742 = dma.done.wait [#allocation6], 1024  }
 0x722   :  { %1743 = vsyncadd [#allocation6], 4294966272 }
 0x723   :  { %1184 = vsyncpa [#allocation5], 1 }
 0x724   :  { %1185 = vsyncpa [#allocation8], 1 }
 0x725   :  { %1186 = vsyncpa [#allocation11], 1 }
 0x726   :  { %1187 = vsyncpa [#allocation6], 1 }

</bundles_post_ra>
